<compile_context>
chip_gen: v7x
topology: tpu7x:2x2x1
jax: 0.10.0
libtpu: 0.0.40
codegen_flags: <defaults>
</compile_context>

<pallas_src>
import jax
import jax.numpy as jnp
from jax import lax
from jax.experimental import pallas as pl
from jax.experimental.pallas import tpu as pltpu


# ---------------------------------------------------------------------------
# Synthetic Ms2VecConfig.conv values (small shapes)
# ---------------------------------------------------------------------------
class ConvCfg:
    channels_in = 4
    channels_med_1 = 8
    channels_out = 8
    conv_kernel_dim_1 = 5
    conv_stride_1 = 1
    conv_padding_1 = 0
    conv_dilation = 1
    pool_kernel_dim_1 = 2
    pool_stride_1 = 2
    pool_padding_1 = 0
    pool_dilation = 1
    conv_kernel_dim_2 = 5
    conv_stride_2 = 1
    conv_padding_2 = 0
    pool_kernel_dim_2 = 2
    pool_stride_2 = 2
    pool_padding_2 = 0
    fc_dim_1 = 32
    emb_dim = 16


IN_DIM = 36      # sequence length L
BATCH = 2
EPS = 1e-5       # BatchNorm1d default eps


def conv_out_dim(l_in, kernel, stride, padding, dilation):
    return (l_in + 2 * padding - dilation * (kernel - 1) - 1) // stride + 1


def _round_up(n, m):
    return (n + m - 1) // m * m


# ---------------------------------------------------------------------------
# Pallas wrapper: parameter folding/packing + fused kernel
# ---------------------------------------------------------------------------
def net1d_forward(x, P, cfg):
    B, Cin, L = x.shape
    Cmed, Cout = cfg.channels_med_1, cfg.channels_out
    K1, K2 = cfg.conv_kernel_dim_1, cfg.conv_kernel_dim_2
    FC, EMB = cfg.fc_dim_1, cfg.emb_dim

    out1 = conv_out_dim(L, K1, cfg.conv_stride_1, cfg.conv_padding_1, cfg.conv_dilation)
    out2 = conv_out_dim(out1, cfg.pool_kernel_dim_1, cfg.pool_stride_1,
                        cfg.pool_padding_1, cfg.pool_dilation)
    out3 = conv_out_dim(out2, K2, cfg.conv_stride_2, cfg.conv_padding_2, cfg.conv_dilation)
    out4 = conv_out_dim(out3, cfg.pool_kernel_dim_2, cfg.pool_stride_2,
                        cfg.pool_padding_2, cfg.pool_dilation)

    # Structural assumptions baked into the kernel (im2col / tap slicing + stride-2 pooling).
    assert cfg.conv_stride_1 == 1 and cfg.conv_stride_2 == 1
    assert cfg.conv_padding_1 == 0 and cfg.conv_padding_2 == 0
    assert cfg.conv_dilation == 1 and cfg.pool_dilation == 1
    assert cfg.pool_kernel_dim_1 == 2 and cfg.pool_stride_1 == 2 and cfg.pool_padding_1 == 0
    assert cfg.pool_kernel_dim_2 == 2 and cfg.pool_stride_2 == 2 and cfg.pool_padding_2 == 0
    assert out1 % 2 == 0 and out3 % 2 == 0   # pool pairs never straddle samples

    f32, bf16 = jnp.float32, jnp.bfloat16
    blob_w = max(Cmed, Cout, FC, EMB)                                      # 32 lanes

    # ---- conv / fc weights as matmul operands ----
    # conv weights: row index = k*C_in + c (matches the im2col column order built below)
    w1t = jnp.transpose(P['w1'], (2, 1, 0)).reshape(K1 * Cin, Cmed)        # (20, 8)
    w2t = jnp.transpose(P['w2'], (2, 1, 0)).reshape(K2 * Cmed, Cout)       # (40, 8)
    # fc1 weight permuted so block l (rows l*Cout..(l+1)*Cout) holds the weights for position l,
    # channel c, matching PyTorch's channel-major flatten (c*out4 + l).
    wfc1t = jnp.transpose(P['fc1_w'].reshape(FC, Cout, out4),
                          (2, 1, 0)).reshape(out4 * Cout, FC)              # (48, 32)
    wfc2t = P['fc2_w'].T                                                   # (32, 16)

    # ---- fold eval-mode BatchNorm (+ preceding bias) into per-channel scale / shift (f32) ----
    sc1 = P['g1'] / jnp.sqrt(P['v1'] + EPS)
    sh1 = (P['b1'] - P['m1']) * sc1 + P['be1']
    sc2 = P['g2'] / jnp.sqrt(P['v2'] + EPS)
    sh2 = (P['b2'] - P['m2']) * sc2 + P['be2']
    sc3 = P['g3'] / jnp.sqrt(P['v3'] + EPS)
    sh3 = (P['fc1_b'] - P['m3']) * sc3 + P['be3']

    # ---- pack weights into one bf16 blob (all sub-blob offsets 8-aligned) ----
    def pad_to(a, rows):
        return jnp.pad(a, ((0, rows - a.shape[0]), (0, blob_w - a.shape[1])))

    o_w1 = 0
    w1_rows = blob_w                          # pad conv1 weight to the full 32-lane contraction
    o_w2 = o_w1 + w1_rows                     # 32
    w2_rows = _round_up(K2 * Cmed, 8)         # 40
    o_f1 = o_w2 + w2_rows                     # 72
    f1_rows = _round_up(out4 * Cout, 8)       # 48
    o_f2 = o_f1 + f1_rows                     # 120
    f2_rows = _round_up(FC, 8)                # 32
    wblob = jnp.concatenate([pad_to(w1t, w1_rows), pad_to(w2t, w2_rows),
                             pad_to(wfc1t, f1_rows), pad_to(wfc2t, f2_rows)],
                            axis=0).astype(bf16)                           # (152, 32) bf16

    # ---- BN scale/shift + fc2 bias in one small f32 blob ----
    def pad_vec(v):
        return jnp.pad(v, (0, blob_w - v.shape[0]))

    vecs = jnp.stack([pad_vec(sc1), pad_vec(sh1),
                      pad_vec(sc2), pad_vec(sh2),
                      pad_vec(sc3), pad_vec(sh3),
                      pad_vec(P['fc2_b']),
                      jnp.zeros((blob_w,), f32)], axis=0).astype(f32)      # (8, 32)

    # ---- conv1 im2col built in the wrapper (XLA): rows = merged batch, cols = k*Cin + c ----
    taps = jnp.stack([x[:, :, k:k + out1] for k in range(K1)], axis=0)     # (K1, B, Cin, out1)
    x_im2col = jnp.transpose(taps, (1, 3, 0, 2)).reshape(B * out1, K1 * Cin)
    x_pack = jnp.pad(x_im2col, ((0, 0), (0, blob_w - K1 * Cin))).astype(bf16)  # (B*out1, 32)

    hp_pad = _round_up(B * out2 + K2 - 1, 8)                               # 40

    # -----------------------------------------------------------------------
    # Fused kernel body (single grid point; everything resident in VMEM)
    # -----------------------------------------------------------------------
    def kernel(x_ref, w_ref, v_ref, out_ref, p1_scr, hp_scr, p2_scr):
        # ---- conv1: pre-built im2col operand, one MXU matmul (bf16 x bf16 -> f32) ----
        h = jnp.dot(x_ref[...], w_ref[o_w1:o_w1 + blob_w, 0:Cmed],
                    preferred_element_type=jnp.float32)                    # (B*out1, Cmed)
        # BN1 (folded) + ReLU (f32)
        h = jnp.maximum(h * v_ref[0:1, 0:Cmed] + v_ref[1:2, 0:Cmed], 0.0)

        # ---- MaxPool1 (k=2, s=2): max of even / odd sublane-strided views ----
        p1_scr[...] = h
        hp = jnp.maximum(p1_scr[pl.ds(0, B * out2, 2), :],
                         p1_scr[pl.ds(1, B * out2, 2), :])                 # (B*out2, Cmed)

        # ---- conv2: per-tap matmul accumulation over sublane-offset views ----
        hp_scr[0:B * out2, :] = hp
        hp_scr[B * out2:, :] = jnp.zeros((hp_pad - B * out2, Cmed), jnp.float32)
        g = None
        for k in range(K2):
            lhs = hp_scr[k:k + B * out2, :].astype(jnp.bfloat16)           # (B*out2, Cmed)
            rhs = w_ref[o_w2 + k * Cmed:o_w2 + (k + 1) * Cmed, 0:Cout]     # (Cmed, Cout)
            t = jnp.dot(lhs, rhs, preferred_element_type=jnp.float32)
            g = t if g is None else g + t                                  # (B*out2, Cout)
        # rows [b*out2 + out3, (b+1)*out2) are don't-care (cross-sample taps); never read below.
        # BN2 + ReLU (f32)
        g = jnp.maximum(g * v_ref[2:3, 0:Cout] + v_ref[3:4, 0:Cout], 0.0)
        p2_scr[...] = g

        # ---- MaxPool2 + flatten + fc1 fused: per-position strided-row matmul accumulation ----
        z = None
        for l in range(out4):
            rows = jnp.maximum(p2_scr[pl.ds(2 * l, B, stride=out2), :],
                               p2_scr[pl.ds(2 * l + 1, B, stride=out2), :])  # (B, Cout)
            rhs = w_ref[o_f1 + l * Cout:o_f1 + (l + 1) * Cout, 0:FC]         # (Cout, FC)
            t = jnp.dot(rows.astype(jnp.bfloat16), rhs,
                        preferred_element_type=jnp.float32)
            z = t if z is None else z + t                                  # (B, FC)
        # BN3 + ReLU (f32)
        z = jnp.maximum(z * v_ref[4:5, 0:FC] + v_ref[5:6, 0:FC], 0.0)

        # ---- fc2 + tanh, single output store ----
        e = jnp.dot(z.astype(jnp.bfloat16), w_ref[o_f2:o_f2 + FC, 0:EMB],
                    preferred_element_type=jnp.float32) + v_ref[6:7, 0:EMB]
        out_ref[...] = jnp.tanh(e)                                         # (B, EMB)

    vmem = pl.BlockSpec(memory_space=pltpu.MemorySpace.VMEM)
    return pl.pallas_call(
        kernel,
        out_shape=jax.ShapeDtypeStruct((B, EMB), jnp.float32),
        in_specs=[vmem, vmem, vmem],
        out_specs=vmem,
        scratch_shapes=[
            pltpu.VMEM((B * out1, Cmed), jnp.float32),   # conv1 act (pool-1 source)
            pltpu.VMEM((hp_pad, Cmed), jnp.float32),     # pooled-1 act (conv2 tap source)
            pltpu.VMEM((B * out2, Cout), jnp.float32),   # conv2 act (pool-2 / fc1 source)
        ],
    )(x_pack, wblob, vecs)


# ---------------------------------------------------------------------------
# Pure-JAX reference (same eval-mode BatchNorm semantics as the kernel)
# ---------------------------------------------------------------------------
def reference_forward(x, P, cfg):
    hp = lax.Precision.HIGHEST

    def bn(y, g, be, m, v):
        return (y - m[None, :, None]) / jnp.sqrt(v + EPS)[None, :, None] \
            * g[None, :, None] + be[None, :, None]

    y = lax.conv_general_dilated(x, P['w1'], (cfg.conv_stride_1,), 'VALID',
                                 dimension_numbers=('NCH', 'OIH', 'NCH'),
                                 precision=hp) + P['b1'][None, :, None]
    y = jnp.maximum(bn(y, P['g1'], P['be1'], P['m1'], P['v1']), 0.0)
    y = lax.reduce_window(y, -jnp.inf, lax.max,
                          (1, 1, cfg.pool_kernel_dim_1), (1, 1, cfg.pool_stride_1), 'VALID')

    y = lax.conv_general_dilated(y, P['w2'], (cfg.conv_stride_2,), 'VALID',
                                 dimension_numbers=('NCH', 'OIH', 'NCH'),
                                 precision=hp) + P['b2'][None, :, None]
    y = jnp.maximum(bn(y, P['g2'], P['be2'], P['m2'], P['v2']), 0.0)
    y = lax.reduce_window(y, -jnp.inf, lax.max,
                          (1, 1, cfg.pool_kernel_dim_2), (1, 1, cfg.pool_stride_2), 'VALID')

    y = y.reshape(y.shape[0], -1)
    z = jnp.dot(y, P['fc1_w'].T, precision=hp) + P['fc1_b']
    z = (z - P['m3']) / jnp.sqrt(P['v3'] + EPS) * P['g3'] + P['be3']
    z = jnp.maximum(z, 0.0)
    e = jnp.tanh(jnp.dot(z, P['fc2_w'].T, precision=hp) + P['fc2_b'])
    return e


# ---------------------------------------------------------------------------
if __name__ == "__main__":
    cfg = ConvCfg
    out1 = conv_out_dim(IN_DIM, cfg.conv_kernel_dim_1, cfg.conv_stride_1,
                        cfg.conv_padding_1, cfg.conv_dilation)
    out2 = conv_out_dim(out1, cfg.pool_kernel_dim_1, cfg.pool_stride_1,
                        cfg.pool_padding_1, cfg.pool_dilation)
    out3 = conv_out_dim(out2, cfg.conv_kernel_dim_2, cfg.conv_stride_2,
                        cfg.conv_padding_2, cfg.conv_dilation)
    out4 = conv_out_dim(out3, cfg.pool_kernel_dim_2, cfg.pool_stride_2,
                        cfg.pool_padding_2, cfg.pool_dilation)
    cnn_out = cfg.channels_out * out4

    key = jax.random.PRNGKey(0)
    ks = jax.random.split(key, 20)
    f32 = jnp.float32

    x = jax.random.normal(ks[0], (BATCH, cfg.channels_in, IN_DIM), f32)

    P = dict(
        w1=0.2 * jax.random.normal(ks[1], (cfg.channels_med_1, cfg.channels_in,
                                           cfg.conv_kernel_dim_1), f32),
        b1=0.1 * jax.random.normal(ks[2], (cfg.channels_med_1,), f32),
        w2=0.2 * jax.random.normal(ks[3], (cfg.channels_out, cfg.channels_med_1,
                                           cfg.conv_kernel_dim_2), f32),
        b2=0.1 * jax.random.normal(ks[4], (cfg.channels_out,), f32),
        fc1_w=0.1 * jax.random.normal(ks[5], (cfg.fc_dim_1, cnn_out), f32),
        fc1_b=0.1 * jax.random.normal(ks[6], (cfg.fc_dim_1,), f32),
        fc2_w=0.1 * jax.random.normal(ks[7], (cfg.emb_dim, cfg.fc_dim_1), f32),
        fc2_b=0.1 * jax.random.normal(ks[8], (cfg.emb_dim,), f32),
        # BatchNorm (eval mode) params / running stats
        g1=1.0 + 0.1 * jax.random.normal(ks[9], (cfg.channels_med_1,), f32),
        be1=0.1 * jax.random.normal(ks[10], (cfg.channels_med_1,), f32),
        m1=0.1 * jax.random.normal(ks[11], (cfg.channels_med_1,), f32),
        v1=jax.random.uniform(ks[12], (cfg.channels_med_1,), f32, 0.5, 1.5),
        g2=1.0 + 0.1 * jax.random.normal(ks[13], (cfg.channels_out,), f32),
        be2=0.1 * jax.random.normal(ks[14], (cfg.channels_out,), f32),
        m2=0.1 * jax.random.normal(ks[15], (cfg.channels_out,), f32),
        v2=jax.random.uniform(ks[16], (cfg.channels_out,), f32, 0.5, 1.5),
        g3=1.0 + 0.1 * jax.random.normal(ks[17], (cfg.fc_dim_1,), f32),
        be3=0.1 * jax.random.normal(ks[18], (cfg.fc_dim_1,), f32),
        m3=0.1 * jax.random.normal(ks[19], (cfg.fc_dim_1,), f32),
        v3=jnp.ones((cfg.fc_dim_1,), f32),
    )

    out = jax.block_until_ready(net1d_forward(x, P, cfg))
    ref = jax.block_until_ready(reference_forward(x, P, cfg))

    assert out.shape == (BATCH, cfg.emb_dim), out.shape
    err = float(jnp.max(jnp.abs(out - ref)))
    assert err < 1e-2, f"max abs diff vs reference: {err}"
    print("KERNEL_OK")
</pallas_src>

<mosaic_0001>
module attributes {stable_mosaic.version = 11 : i64} {
  func.func @kernel(%arg0: memref<64x32xbf16, #tpu.memory_space<vmem>>, %arg1: memref<152x32xbf16, #tpu.memory_space<vmem>>, %arg2: memref<8x32xf32, #tpu.memory_space<vmem>>, %arg3: memref<2x16xf32, #tpu.memory_space<vmem>>, %arg4: memref<64x8xf32, #tpu.memory_space<vmem>>, %arg5: memref<40x8xf32, #tpu.memory_space<vmem>>, %arg6: memref<32x8xf32, #tpu.memory_space<vmem>>) attributes {dimension_semantics = [], scalar_prefetch = 0 : i64, scratch_operands = 3 : i64, tpu.core_type = #tpu.core_type<tc>} {
    %c0 = arith.constant 0 : index
    %c0_0 = arith.constant 0 : index
    %0 = vector.load %arg0[%c0, %c0_0] : memref<64x32xbf16, #tpu.memory_space<vmem>>, vector<64x32xbf16>
    %c0_1 = arith.constant 0 : index
    %c0_2 = arith.constant 0 : index
    %1 = vector.load %arg1[%c0_1, %c0_2] : memref<152x32xbf16, #tpu.memory_space<vmem>>, vector<32x8xbf16>
    %cst = arith.constant dense<0.000000e+00> : vector<64x8xf32>
    %2 = tpu.matmul %0, %1, %cst {dimension_numbers = #tpu.dot_dimension_numbers<[1], [0], [0], [1], [0, 0, 1, 1], [], []>} : vector<64x32xbf16>, vector<32x8xbf16>, vector<64x8xf32> -> vector<64x8xf32>
    %c0_3 = arith.constant 0 : index
    %c0_4 = arith.constant 0 : index
    %3 = vector.load %arg2[%c0_3, %c0_4] : memref<8x32xf32, #tpu.memory_space<vmem>>, vector<1x8xf32>
    %4 = vector.broadcast %3 : vector<1x8xf32> to vector<64x8xf32>
    %5 = arith.mulf %2, %4 : vector<64x8xf32>
    %c1 = arith.constant 1 : index
    %c0_5 = arith.constant 0 : index
    %6 = vector.load %arg2[%c1, %c0_5] : memref<8x32xf32, #tpu.memory_space<vmem>>, vector<1x8xf32>
    %7 = vector.broadcast %6 : vector<1x8xf32> to vector<64x8xf32>
    %8 = arith.addf %5, %7 : vector<64x8xf32>
    %cst_6 = arith.constant 0.000000e+00 : f32
    %9 = vector.broadcast %cst_6 : f32 to vector<64x8xf32>
    %10 = arith.maximumf %8, %9 : vector<64x8xf32>
    %c0_7 = arith.constant 0 : index
    %c0_8 = arith.constant 0 : index
    %11 = vector.load %arg4[%c0_7, %c0_8] : memref<64x8xf32, #tpu.memory_space<vmem>>, vector<64x8xf32>
    tpu.vector_store %arg4[%c0_7, %c0_8], %10 {strides = array<i32>} : memref<64x8xf32, #tpu.memory_space<vmem>>, vector<64x8xf32>,
    %c0_9 = arith.constant 0 : index
    %c0_10 = arith.constant 0 : index
    %12 = tpu.strided_load %arg4[%c0_9, %c0_10] {strides = array<i32: 2, 1>} : memref<64x8xf32, #tpu.memory_space<vmem>>, vector<32x8xf32>
    %c1_11 = arith.constant 1 : index
    %c0_12 = arith.constant 0 : index
    %13 = tpu.strided_load %arg4[%c1_11, %c0_12] {strides = array<i32: 2, 1>} : memref<64x8xf32, #tpu.memory_space<vmem>>, vector<32x8xf32>
    %14 = arith.maximumf %12, %13 : vector<32x8xf32>
    %c0_13 = arith.constant 0 : index
    %c0_14 = arith.constant 0 : index
    %15 = vector.load %arg5[%c0_13, %c0_14] : memref<40x8xf32, #tpu.memory_space<vmem>>, vector<32x8xf32>
    tpu.vector_store %arg5[%c0_13, %c0_14], %14 {strides = array<i32>} : memref<40x8xf32, #tpu.memory_space<vmem>>, vector<32x8xf32>,
    %cst_15 = arith.constant 0.000000e+00 : f32
    %16 = vector.broadcast %cst_15 : f32 to vector<8x8xf32>
    %c32 = arith.constant 32 : index
    %c0_16 = arith.constant 0 : index
    %17 = vector.load %arg5[%c32, %c0_16] : memref<40x8xf32, #tpu.memory_space<vmem>>, vector<8x8xf32>
    tpu.vector_store %arg5[%c32, %c0_16], %16 {strides = array<i32>} : memref<40x8xf32, #tpu.memory_space<vmem>>, vector<8x8xf32>,
    %c0_17 = arith.constant 0 : index
    %c0_18 = arith.constant 0 : index
    %18 = vector.load %arg5[%c0_17, %c0_18] : memref<40x8xf32, #tpu.memory_space<vmem>>, vector<32x8xf32>
    %19 = arith.truncf %18 : vector<32x8xf32> to vector<32x8xbf16>
    %c32_19 = arith.constant 32 : index
    %c0_20 = arith.constant 0 : index
    %20 = vector.load %arg1[%c32_19, %c0_20] : memref<152x32xbf16, #tpu.memory_space<vmem>>, vector<8x8xbf16>
    %cst_21 = arith.constant dense<0.000000e+00> : vector<32x8xf32>
    %21 = tpu.matmul %19, %20, %cst_21 {dimension_numbers = #tpu.dot_dimension_numbers<[1], [0], [0], [1], [0, 0, 1, 1], [], []>} : vector<32x8xbf16>, vector<8x8xbf16>, vector<32x8xf32> -> vector<32x8xf32>
    %c1_22 = arith.constant 1 : index
    %c0_23 = arith.constant 0 : index
    %22 = vector.load %arg5[%c1_22, %c0_23] : memref<40x8xf32, #tpu.memory_space<vmem>>, vector<32x8xf32>
    %23 = arith.truncf %22 : vector<32x8xf32> to vector<32x8xbf16>
    %c40 = arith.constant 40 : index
    %c0_24 = arith.constant 0 : index
    %24 = vector.load %arg1[%c40, %c0_24] : memref<152x32xbf16, #tpu.memory_space<vmem>>, vector<8x8xbf16>
    %cst_25 = arith.constant dense<0.000000e+00> : vector<32x8xf32>
    %25 = tpu.matmul %23, %24, %cst_25 {dimension_numbers = #tpu.dot_dimension_numbers<[1], [0], [0], [1], [0, 0, 1, 1], [], []>} : vector<32x8xbf16>, vector<8x8xbf16>, vector<32x8xf32> -> vector<32x8xf32>
    %26 = arith.addf %21, %25 : vector<32x8xf32>
    %c2 = arith.constant 2 : index
    %c0_26 = arith.constant 0 : index
    %27 = vector.load %arg5[%c2, %c0_26] : memref<40x8xf32, #tpu.memory_space<vmem>>, vector<32x8xf32>
    %28 = arith.truncf %27 : vector<32x8xf32> to vector<32x8xbf16>
    %c48 = arith.constant 48 : index
    %c0_27 = arith.constant 0 : index
    %29 = vector.load %arg1[%c48, %c0_27] : memref<152x32xbf16, #tpu.memory_space<vmem>>, vector<8x8xbf16>
    %cst_28 = arith.constant dense<0.000000e+00> : vector<32x8xf32>
    %30 = tpu.matmul %28, %29, %cst_28 {dimension_numbers = #tpu.dot_dimension_numbers<[1], [0], [0], [1], [0, 0, 1, 1], [], []>} : vector<32x8xbf16>, vector<8x8xbf16>, vector<32x8xf32> -> vector<32x8xf32>
    %31 = arith.addf %26, %30 : vector<32x8xf32>
    %c3 = arith.constant 3 : index
    %c0_29 = arith.constant 0 : index
    %32 = vector.load %arg5[%c3, %c0_29] : memref<40x8xf32, #tpu.memory_space<vmem>>, vector<32x8xf32>
    %33 = arith.truncf %32 : vector<32x8xf32> to vector<32x8xbf16>
    %c56 = arith.constant 56 : index
    %c0_30 = arith.constant 0 : index
    %34 = vector.load %arg1[%c56, %c0_30] : memref<152x32xbf16, #tpu.memory_space<vmem>>, vector<8x8xbf16>
    %cst_31 = arith.constant dense<0.000000e+00> : vector<32x8xf32>
    %35 = tpu.matmul %33, %34, %cst_31 {dimension_numbers = #tpu.dot_dimension_numbers<[1], [0], [0], [1], [0, 0, 1, 1], [], []>} : vector<32x8xbf16>, vector<8x8xbf16>, vector<32x8xf32> -> vector<32x8xf32>
    %36 = arith.addf %31, %35 : vector<32x8xf32>
    %c4 = arith.constant 4 : index
    %c0_32 = arith.constant 0 : index
    %37 = vector.load %arg5[%c4, %c0_32] : memref<40x8xf32, #tpu.memory_space<vmem>>, vector<32x8xf32>
    %38 = arith.truncf %37 : vector<32x8xf32> to vector<32x8xbf16>
    %c64 = arith.constant 64 : index
    %c0_33 = arith.constant 0 : index
    %39 = vector.load %arg1[%c64, %c0_33] : memref<152x32xbf16, #tpu.memory_space<vmem>>, vector<8x8xbf16>
    %cst_34 = arith.constant dense<0.000000e+00> : vector<32x8xf32>
    %40 = tpu.matmul %38, %39, %cst_34 {dimension_numbers = #tpu.dot_dimension_numbers<[1], [0], [0], [1], [0, 0, 1, 1], [], []>} : vector<32x8xbf16>, vector<8x8xbf16>, vector<32x8xf32> -> vector<32x8xf32>
    %41 = arith.addf %36, %40 : vector<32x8xf32>
    %c2_35 = arith.constant 2 : index
    %c0_36 = arith.constant 0 : index
    %42 = vector.load %arg2[%c2_35, %c0_36] : memref<8x32xf32, #tpu.memory_space<vmem>>, vector<1x8xf32>
    %43 = vector.broadcast %42 : vector<1x8xf32> to vector<32x8xf32>
    %44 = arith.mulf %41, %43 : vector<32x8xf32>
    %c3_37 = arith.constant 3 : index
    %c0_38 = arith.constant 0 : index
    %45 = vector.load %arg2[%c3_37, %c0_38] : memref<8x32xf32, #tpu.memory_space<vmem>>, vector<1x8xf32>
    %46 = vector.broadcast %45 : vector<1x8xf32> to vector<32x8xf32>
    %47 = arith.addf %44, %46 : vector<32x8xf32>
    %cst_39 = arith.constant 0.000000e+00 : f32
    %48 = vector.broadcast %cst_39 : f32 to vector<32x8xf32>
    %49 = arith.maximumf %47, %48 : vector<32x8xf32>
    %c0_40 = arith.constant 0 : index
    %c0_41 = arith.constant 0 : index
    %50 = vector.load %arg6[%c0_40, %c0_41] : memref<32x8xf32, #tpu.memory_space<vmem>>, vector<32x8xf32>
    tpu.vector_store %arg6[%c0_40, %c0_41], %49 {strides = array<i32>} : memref<32x8xf32, #tpu.memory_space<vmem>>, vector<32x8xf32>,
    %c0_42 = arith.constant 0 : index
    %c0_43 = arith.constant 0 : index
    %51 = tpu.strided_load %arg6[%c0_42, %c0_43] {strides = array<i32: 16, 1>} : memref<32x8xf32, #tpu.memory_space<vmem>>, vector<2x8xf32>
    %c1_44 = arith.constant 1 : index
    %c0_45 = arith.constant 0 : index
    %52 = tpu.strided_load %arg6[%c1_44, %c0_45] {strides = array<i32: 16, 1>} : memref<32x8xf32, #tpu.memory_space<vmem>>, vector<2x8xf32>
    %53 = arith.maximumf %51, %52 : vector<2x8xf32>
    %c72 = arith.constant 72 : index
    %c0_46 = arith.constant 0 : index
    %54 = vector.load %arg1[%c72, %c0_46] : memref<152x32xbf16, #tpu.memory_space<vmem>>, vector<8x32xbf16>
    %55 = arith.truncf %53 : vector<2x8xf32> to vector<2x8xbf16>
    %cst_47 = arith.constant dense<0.000000e+00> : vector<2x32xf32>
    %56 = tpu.matmul %55, %54, %cst_47 {dimension_numbers = #tpu.dot_dimension_numbers<[1], [0], [0], [1], [0, 0, 1, 1], [], []>} : vector<2x8xbf16>, vector<8x32xbf16>, vector<2x32xf32> -> vector<2x32xf32>
    %c2_48 = arith.constant 2 : index
    %c0_49 = arith.constant 0 : index
    %57 = tpu.strided_load %arg6[%c2_48, %c0_49] {strides = array<i32: 16, 1>} : memref<32x8xf32, #tpu.memory_space<vmem>>, vector<2x8xf32>
    %c3_50 = arith.constant 3 : index
    %c0_51 = arith.constant 0 : index
    %58 = tpu.strided_load %arg6[%c3_50, %c0_51] {strides = array<i32: 16, 1>} : memref<32x8xf32, #tpu.memory_space<vmem>>, vector<2x8xf32>
    %59 = arith.maximumf %57, %58 : vector<2x8xf32>
    %c80 = arith.constant 80 : index
    %c0_52 = arith.constant 0 : index
    %60 = vector.load %arg1[%c80, %c0_52] : memref<152x32xbf16, #tpu.memory_space<vmem>>, vector<8x32xbf16>
    %61 = arith.truncf %59 : vector<2x8xf32> to vector<2x8xbf16>
    %cst_53 = arith.constant dense<0.000000e+00> : vector<2x32xf32>
    %62 = tpu.matmul %61, %60, %cst_53 {dimension_numbers = #tpu.dot_dimension_numbers<[1], [0], [0], [1], [0, 0, 1, 1], [], []>} : vector<2x8xbf16>, vector<8x32xbf16>, vector<2x32xf32> -> vector<2x32xf32>
    %63 = arith.addf %56, %62 : vector<2x32xf32>
    %c4_54 = arith.constant 4 : index
    %c0_55 = arith.constant 0 : index
    %64 = tpu.strided_load %arg6[%c4_54, %c0_55] {strides = array<i32: 16, 1>} : memref<32x8xf32, #tpu.memory_space<vmem>>, vector<2x8xf32>
    %c5 = arith.constant 5 : index
    %c0_56 = arith.constant 0 : index
    %65 = tpu.strided_load %arg6[%c5, %c0_56] {strides = array<i32: 16, 1>} : memref<32x8xf32, #tpu.memory_space<vmem>>, vector<2x8xf32>
    %66 = arith.maximumf %64, %65 : vector<2x8xf32>
    %c88 = arith.constant 88 : index
    %c0_57 = arith.constant 0 : index
    %67 = vector.load %arg1[%c88, %c0_57] : memref<152x32xbf16, #tpu.memory_space<vmem>>, vector<8x32xbf16>
    %68 = arith.truncf %66 : vector<2x8xf32> to vector<2x8xbf16>
    %cst_58 = arith.constant dense<0.000000e+00> : vector<2x32xf32>
    %69 = tpu.matmul %68, %67, %cst_58 {dimension_numbers = #tpu.dot_dimension_numbers<[1], [0], [0], [1], [0, 0, 1, 1], [], []>} : vector<2x8xbf16>, vector<8x32xbf16>, vector<2x32xf32> -> vector<2x32xf32>
    %70 = arith.addf %63, %69 : vector<2x32xf32>
    %c6 = arith.constant 6 : index
    %c0_59 = arith.constant 0 : index
    %71 = tpu.strided_load %arg6[%c6, %c0_59] {strides = array<i32: 16, 1>} : memref<32x8xf32, #tpu.memory_space<vmem>>, vector<2x8xf32>
    %c7 = arith.constant 7 : index
    %c0_60 = arith.constant 0 : index
    %72 = tpu.strided_load %arg6[%c7, %c0_60] {strides = array<i32: 16, 1>} : memref<32x8xf32, #tpu.memory_space<vmem>>, vector<2x8xf32>
    %73 = arith.maximumf %71, %72 : vector<2x8xf32>
    %c96 = arith.constant 96 : index
    %c0_61 = arith.constant 0 : index
    %74 = vector.load %arg1[%c96, %c0_61] : memref<152x32xbf16, #tpu.memory_space<vmem>>, vector<8x32xbf16>
    %75 = arith.truncf %73 : vector<2x8xf32> to vector<2x8xbf16>
    %cst_62 = arith.constant dense<0.000000e+00> : vector<2x32xf32>
    %76 = tpu.matmul %75, %74, %cst_62 {dimension_numbers = #tpu.dot_dimension_numbers<[1], [0], [0], [1], [0, 0, 1, 1], [], []>} : vector<2x8xbf16>, vector<8x32xbf16>, vector<2x32xf32> -> vector<2x32xf32>
    %77 = arith.addf %70, %76 : vector<2x32xf32>
    %c8 = arith.constant 8 : index
    %c0_63 = arith.constant 0 : index
    %78 = tpu.strided_load %arg6[%c8, %c0_63] {strides = array<i32: 16, 1>} : memref<32x8xf32, #tpu.memory_space<vmem>>, vector<2x8xf32>
    %c9 = arith.constant 9 : index
    %c0_64 = arith.constant 0 : index
    %79 = tpu.strided_load %arg6[%c9, %c0_64] {strides = array<i32: 16, 1>} : memref<32x8xf32, #tpu.memory_space<vmem>>, vector<2x8xf32>
    %80 = arith.maximumf %78, %79 : vector<2x8xf32>
    %c104 = arith.constant 104 : index
    %c0_65 = arith.constant 0 : index
    %81 = vector.load %arg1[%c104, %c0_65] : memref<152x32xbf16, #tpu.memory_space<vmem>>, vector<8x32xbf16>
    %82 = arith.truncf %80 : vector<2x8xf32> to vector<2x8xbf16>
    %cst_66 = arith.constant dense<0.000000e+00> : vector<2x32xf32>
    %83 = tpu.matmul %82, %81, %cst_66 {dimension_numbers = #tpu.dot_dimension_numbers<[1], [0], [0], [1], [0, 0, 1, 1], [], []>} : vector<2x8xbf16>, vector<8x32xbf16>, vector<2x32xf32> -> vector<2x32xf32>
    %84 = arith.addf %77, %83 : vector<2x32xf32>
    %c10 = arith.constant 10 : index
    %c0_67 = arith.constant 0 : index
    %85 = tpu.strided_load %arg6[%c10, %c0_67] {strides = array<i32: 16, 1>} : memref<32x8xf32, #tpu.memory_space<vmem>>, vector<2x8xf32>
    %c11 = arith.constant 11 : index
    %c0_68 = arith.constant 0 : index
    %86 = tpu.strided_load %arg6[%c11, %c0_68] {strides = array<i32: 16, 1>} : memref<32x8xf32, #tpu.memory_space<vmem>>, vector<2x8xf32>
    %87 = arith.maximumf %85, %86 : vector<2x8xf32>
    %c112 = arith.constant 112 : index
    %c0_69 = arith.constant 0 : index
    %88 = vector.load %arg1[%c112, %c0_69] : memref<152x32xbf16, #tpu.memory_space<vmem>>, vector<8x32xbf16>
    %89 = arith.truncf %87 : vector<2x8xf32> to vector<2x8xbf16>
    %cst_70 = arith.constant dense<0.000000e+00> : vector<2x32xf32>
    %90 = tpu.matmul %89, %88, %cst_70 {dimension_numbers = #tpu.dot_dimension_numbers<[1], [0], [0], [1], [0, 0, 1, 1], [], []>} : vector<2x8xbf16>, vector<8x32xbf16>, vector<2x32xf32> -> vector<2x32xf32>
    %91 = arith.addf %84, %90 : vector<2x32xf32>
    %c4_71 = arith.constant 4 : index
    %c0_72 = arith.constant 0 : index
    %92 = vector.load %arg2[%c4_71, %c0_72] : memref<8x32xf32, #tpu.memory_space<vmem>>, vector<1x32xf32>
    %93 = vector.broadcast %92 : vector<1x32xf32> to vector<2x32xf32>
    %94 = arith.mulf %91, %93 : vector<2x32xf32>
    %c5_73 = arith.constant 5 : index
    %c0_74 = arith.constant 0 : index
    %95 = vector.load %arg2[%c5_73, %c0_74] : memref<8x32xf32, #tpu.memory_space<vmem>>, vector<1x32xf32>
    %96 = vector.broadcast %95 : vector<1x32xf32> to vector<2x32xf32>
    %97 = arith.addf %94, %96 : vector<2x32xf32>
    %cst_75 = arith.constant 0.000000e+00 : f32
    %98 = vector.broadcast %cst_75 : f32 to vector<2x32xf32>
    %99 = arith.maximumf %97, %98 : vector<2x32xf32>
    %100 = arith.truncf %99 : vector<2x32xf32> to vector<2x32xbf16>
    %c120 = arith.constant 120 : index
    %c0_76 = arith.constant 0 : index
    %101 = vector.load %arg1[%c120, %c0_76] : memref<152x32xbf16, #tpu.memory_space<vmem>>, vector<32x16xbf16>
    %cst_77 = arith.constant dense<0.000000e+00> : vector<2x16xf32>
    %102 = tpu.matmul %100, %101, %cst_77 {dimension_numbers = #tpu.dot_dimension_numbers<[1], [0], [0], [1], [0, 0, 1, 1], [], []>} : vector<2x32xbf16>, vector<32x16xbf16>, vector<2x16xf32> -> vector<2x16xf32>
    %c6_78 = arith.constant 6 : index
    %c0_79 = arith.constant 0 : index
    %103 = vector.load %arg2[%c6_78, %c0_79] : memref<8x32xf32, #tpu.memory_space<vmem>>, vector<1x16xf32>
    %104 = vector.broadcast %103 : vector<1x16xf32> to vector<2x16xf32>
    %105 = arith.addf %102, %104 : vector<2x16xf32>
    %106 = math.tanh %105 : vector<2x16xf32>
    %c0_80 = arith.constant 0 : index
    %c0_81 = arith.constant 0 : index
    %107 = vector.load %arg3[%c0_80, %c0_81] : memref<2x16xf32, #tpu.memory_space<vmem>>, vector<2x16xf32>
    tpu.vector_store %arg3[%c0_80, %c0_81], %106 {strides = array<i32>} : memref<2x16xf32, #tpu.memory_space<vmem>>, vector<2x16xf32>,
    return
  }
}

</mosaic_0001>

<bundles_post_ra>
// kernel: tpu_custom_call.1
= control target key start
LH: loop header
LB: loop body
LE: loop exit
PB: predicated region body
PF: predicated region fallthrough
CT: control target
= control target key end

     0   :  { %vm60_vm0 = vcmask 261120   ;;  %s1419_s0 = inlined_call_operand.vmem [shape: bf16[64,32], index: 0, kind: input, shape index: {}]   ;;  %s1420_s1 = inlined_call_operand.vmem [shape: bf16[152,32], index: 1, kind: input, shape index: {}]   ;;  %s1421_s2 = inlined_call_operand.vmem [shape: f32[8,32], index: 2, kind: input, shape index: {}]   ;;  %s1422_s3 = inlined_call_operand.hbm [shape: f32[2,16], index: 3, kind: output, shape index: {}]  }
   0x1   :  { %v1191_v0 = vld [vmem:[%s1420_s1] sm:$0xff]   ;;  %v1192_v1 = vld [vmem:[%s1420_s1 + $0x8] sm:$0xff]   ;;  %v1194_v3 = vld [vmem:[%s1419_s0 + $0x10] sm:$0xff]  }
   0x2   :  { %1057 = vmatprep.subr.bf16.mxu0 %v1191_v0  ;;  %1143 = vmatprep.subr.bf16.mxu1 %v1191_v0  ;;  %v1193_v2 = vld [vmem:[%s1419_s0] sm:$0xff]   ;;  %v1195_v4 = vld [vmem:[%s1419_s0 + $0x8] sm:$0xff]   ;;  %v1196_v5 = vld [vmem:[%s1419_s0 + $0x18] sm:$0xff]  }
   0x3   :  { %1058 = vmatpush3.bf16.msra.mxu0 %v1191_v0  ;;  %1145 = vmatpush3.bf16.msra.mxu1 %v1191_v0 }
   0x4   :  { %1059 = vmatprep.subr.bf16.mxu0 %v1192_v1  ;;  %1144 = vmatprep.subr.bf16.mxu1 %v1192_v1 }
   0x5   :  { %1061 = vmatprep.mubr.msk.bf16.mxu0 %vm60_vm0, %v1193_v2  ;;  %1065 = vmatprep.mubr.msk.bf16.mxu1 %vm60_vm0, %v1194_v3 }
   0x7   :  { %1060 = vmatpush3.bf16.msra.mxu0 %v1192_v1  ;;  %1146 = vmatpush3.bf16.msra.mxu1 %v1192_v1 }
   0x8   :  { %8 = vsyncpa [#allocation6], 0  ;;  %vm172_vm1 = vcmask 64512   ;;  %v1225_v6 = vmov 0.0   ;;  %v218_v7 = vld [vmem:[%s1420_s1 + $0x14] sm:$0xf] }
   0x9   :  { %204 = vst.msk [vmem:[#allocation3 + $0x20] sm:$0xff] %vm172_vm1, %v1225_v6  ;;  %1099 = vmatprep.subr.bf16.mxu0 %v1225_v6  ;;  %vm225_vm2 = vcmask 1043456   ;;  %v1281_v9 = vld [vmem:[%s1420_s1 + $0x10] sm:$0xf]  ;;  %v995_v10 = vld [vmem:[%s1421_s2] ss:$0 sm:$0xff] }
   0xa   :  { %1062 = vmatmul.mubr.msk.bf16.vlgmr.msra.gmra.mrb[0].mxu0 %vm60_vm0, %v1195_v4  ;;  %1066 = vmatmul.mubr.msk.bf16.vlgmr.msra.gmra.mrb[0].mxu1 %vm60_vm0, %v1196_v5  ;;  %v227_v8 = vsel %vm225_vm2, %v218_v7, 0  ;;  %v996_v12 = vld [vmem:[%s1421_s2 + $0x1] ss:$0 sm:$0xff]  ;;  %v285_v0 = vsel %vm225_vm2, %v1281_v9, 0  ;;  %v342_v2 = vld [vmem:[%s1420_s1 + $0x18] sm:$0xf] }
   0xb   :  { %1183 = vmatprep.subr.msk.bf16.mxu1 %vm225_vm2, %v218_v7  ;;  %vm1226_vm3 = vmmov 0   ;;  %s1227_s7 = smov [#allocation5]   ;;  %vm969_vm4 = vcmask 123904  }
   0xc   :  { %1070 = vmatpush3.bf16.msra.mxu1 %v227_v8  ;;  %1101 = vmatprep.mubr.msk.bf16.mxu0 %vm1226_vm3, %v1225_v6  ;;  %s977_s8 = sshll.u32 %s1227_s7, 4  ;;  %s978_s8 = int_to_ptr.vmem [resolvable:$true] %s977_s8 }
   0xd   :  { %1184 = vmatprep.subr.msk.bf16.mxu1 %vm225_vm2, %v1281_v9  ;;  %v350_v9 = vsel %vm225_vm2, %v342_v2, 0  ;;  %s1201_s9 = scalar_lea.vmem %s978_s8, 32  ;;  %p1206_p1 = scmp.lt.s32.totalorder %s978_s8, %s978_s8 }
   0xe   :  { %p1202_p0 = scmp.ne.s32.totalorder %s978_s8, %s1201_s9  ;;  %p1207_p2 = scmp.lt.s32.totalorder %s1201_s9, %s1201_s9 }
  0x10   :  { %p1208_p3 = por %p1207_p2, %p1206_p1 }
  0x12   :  { %p1209_p4 = pnand %p1208_p3, %p1202_p0 }
  0xdd   :  { %v1063_v11 = vpop.f32.mrb[0].mxu0  ;;  %v1067_v13 = vpop.f32.mrb[0].mxu1 }
  0xde   :  { %v145_v14 = vmul.f32 %v1063_v11, %v995_v10  ;;  %v149_v15 = vmul.f32 %v1067_v13, %v995_v10  ;;  %v107_v16 = vpop.f32.mrb[1].mxu0  ;;  %v123_v17 = vpop.f32.mrb[1].mxu1  ;;  %v411_v11 = vld [vmem:[%s1420_s1 + $0x1c] sm:$0xf] }
  0xdf   :  { %v143_v18 = vmul.f32 %v995_v10, %v107_v16  ;;  %v147_v19 = vmul.f32 %v995_v10, %v123_v17  ;;  %v1064_v20 = vpop.f32.mrb[2].mxu0  ;;  %v1068_v21 = vpop.f32.mrb[2].mxu1  ;;  %v419_v17 = vsel %vm225_vm2, %v411_v11, 0 }
  0xe0   :  { %v158_v22 = vadd.f32 %v996_v12, %v145_v14  ;;  %v162_v23 = vadd.f32 %v996_v12, %v149_v15  ;;  %v146_v24 = vmul.f32 %v1064_v20, %v995_v10  ;;  %v150_v25 = vmul.f32 %v1068_v21, %v995_v10  ;;  %v110_v26 = vpop.f32.mrb[3].mxu0  ;;  %v126_v27 = vpop.f32.mrb[3].mxu1 }
  0xe1   :  { %v156_v28 = vadd.f32 %v996_v12, %v143_v18  ;;  %v160_v29 = vadd.f32 %v996_v12, %v147_v19  ;;  %v144_v30 = vmul.f32 %v995_v10, %v110_v26  ;;  %v148_v31 = vmul.f32 %v995_v10, %v126_v27  ;;  %v480_v19 = vld [vmem:[%s1420_s1 + $0x20] sm:$0xf] }
  0xe2   :  { %v166_v32 = vmax.f32 %v158_v22, 0.0  ;;  %v170_v33 = vmax.f32 %v162_v23, 0.0  ;;  %v159_v34 = vadd.f32 %v996_v12, %v146_v24  ;;  %v163_v35 = vadd.f32 %v996_v12, %v150_v25 }
  0xe3   :  { %v164_v36 = vmax.f32 %v156_v28, 0.0  ;;  %v168_v37 = vmax.f32 %v160_v29, 0.0  ;;  %v157_v38 = vadd.f32 %v996_v12, %v144_v30  ;;  %v161_v39 = vadd.f32 %v996_v12, %v148_v31  ;;  %v580_v30 = vld [vmem:[%s1420_s1 + $0x28] sm:$0xf] }
  0xe4   :  { %175 = vst.msk [vmem:[#allocation2 + $0x10] sm:$0xff] %vm172_vm1, %v166_v32  ;;  %179 = vst.msk [vmem:[#allocation2 + $0x30] sm:$0xff] %vm172_vm1, %v170_v33  ;;  %v167_v40 = vmax.f32 %v159_v34, 0.0  ;;  %v171_v41 = vmax.f32 %v163_v35, 0.0  ;;  %v488_v25 = vsel %vm225_vm2, %v480_v19, 0  ;;  %v586_v31 = vsel %vm225_vm2, %v580_v30, 0 }
  0xe5   :  { %173 = vst.msk [vmem:[#allocation2] sm:$0xff] %vm172_vm1, %v164_v36  ;;  %177 = vst.msk [vmem:[#allocation2 + $0x20] sm:$0xff] %vm172_vm1, %v168_v37  ;;  %v165_v42 = vmax.f32 %v157_v38, 0.0  ;;  %v169_v43 = vmax.f32 %v161_v39, 0.0  ;;  %1100 = vmatpush3.bf16.msra.mxu0 %v586_v31  ;;  %v1007_v32 = vld [vmem:[%s1421_s2 + $0x2] ss:$0 sm:$0xff] }
  0xe6   :  { %176 = vst.msk [vmem:[#allocation2 + $0x18] sm:$0xff] %vm172_vm1, %v167_v40  ;;  %180 = vst.msk [vmem:[#allocation2 + $0x38] sm:$0xff] %vm172_vm1, %v171_v41  ;;  %1105 = vmatprep.subr.bf16.mxu0 %v1225_v6  ;;  %v1008_v34 = vld [vmem:[%s1421_s2 + $0x3] ss:$0 sm:$0xff] }
  0xe7   :  { %174 = vst.msk [vmem:[#allocation2 + $0x8] sm:$0xff] %vm172_vm1, %v165_v42  ;;  %178 = vst.msk [vmem:[#allocation2 + $0x28] sm:$0xff] %vm172_vm1, %v169_v43 }
  0xed   :  { %v183_v44 = vld [vmem:[#allocation2 + $0x10] ss:$2 sm:$0xff]  ;;  %v191_v45 = vld [vmem:[#allocation2 + $0x11] ss:$2 sm:$0xff] }
  0xee   :  { %v187_v46 = vld [vmem:[#allocation2 + $0x30] ss:$2 sm:$0xff]  ;;  %v197_v47 = vmax.f32 %v183_v44, %v191_v45  ;;  %v195_v48 = vld [vmem:[#allocation2 + $0x31] ss:$2 sm:$0xff]  ;;  %v181_v49 = vld [vmem:[#allocation2] ss:$2 sm:$0xff] }
  0xef   :  { %v189_v50 = vld [vmem:[#allocation2 + $0x1] ss:$2 sm:$0xff]  ;;  %v199_v51 = vmax.f32 %v187_v46, %v195_v48  ;;  %v185_v53 = vld [vmem:[#allocation2 + $0x20] ss:$2 sm:$0xff] }
  0xf0   :  { %v196_v52 = vmax.f32 %v181_v49, %v189_v50  ;;  %v193_v54 = vld [vmem:[#allocation2 + $0x21] ss:$2 sm:$0xff]  ;;  %201 = vst.msk [vmem:[#allocation3 + $0x8] sm:$0xff] %vm172_vm1, %v197_v47 }
  0xf1   :  { %v198_v55 = vmax.f32 %v185_v53, %v193_v54  ;;  %203 = vst.msk [vmem:[#allocation3 + $0x18] sm:$0xff] %vm172_vm1, %v199_v51  ;;  %v573_v50 = vld [vmem:[%s1420_s1 + $0x24] sm:$0xf] }
  0xf2   :  { %200 = vst.msk [vmem:[#allocation3] sm:$0xff] %vm172_vm1, %v196_v52 }
  0xf3   :  { %202 = vst.msk [vmem:[#allocation3 + $0x10] sm:$0xff] %vm172_vm1, %v198_v55  ;;  %v632_v55 = vsel %vm225_vm2, %v573_v50, 0 }
  0xf7   :  { %v206_v58 = vld [vmem:[#allocation3 + $0x8] sm:$0xff] }
  0xf8   :  { %v215_v57 = vld [vmem:[#allocation3 + $0x19] sm:$0xff] }
  0xf9   :  { %v212_v56 = vld [vmem:[#allocation3 + $0x1] sm:$0xff]  ;;  %v208_v4 = vld [vmem:[#allocation3 + $0x18] sm:$0xff] }
  0xfa   :  { %v213_v59 = vld [vmem:[#allocation3 + $0x9] sm:$0xff]  ;;  %v214_v60 = vld [vmem:[#allocation3 + $0x11] sm:$0xff]  ;;  %v205_v61 = vld [vmem:[#allocation3] sm:$0xff] }
  0xfb   :  { %v216_v62 = vpack.c.bf16 %v213_v59, %v212_v56  ;;  %v217_v63 = vpack.c.bf16 %v215_v57, %v214_v60  ;;  %v209_v1 = vpack.c.bf16 %v206_v58, %v205_v61  ;;  %v207_v3 = vld [vmem:[#allocation3 + $0x10] sm:$0xff]  ;;  %v336_v5 = vld [vmem:[#allocation3 + $0x2] sm:$0xff]  ;;  %v339_v13 = vld [vmem:[#allocation3 + $0x1a] sm:$0xff] }
  0xfc   :  { %v337_v7 = vld [vmem:[#allocation3 + $0xa] sm:$0xff]  ;;  %v210_v8 = vpack.c.bf16 %v208_v4, %v207_v3  ;;  %v338_v12 = vld [vmem:[#allocation3 + $0x12] sm:$0xff]  ;;  %v408_v21 = vld [vmem:[#allocation3 + $0x1b] sm:$0xff] }
  0xfd   :  { %1071 = vmatprep.mubr.msk.bf16.mxu1 %vm172_vm1, %v216_v62  ;;  %v340_v10 = vpack.c.bf16 %v337_v7, %v336_v5  ;;  %v405_v14 = vld [vmem:[#allocation3 + $0x3] sm:$0xff]  ;;  %v406_v15 = vld [vmem:[#allocation3 + $0xb] sm:$0xff]  ;;  %v341_v16 = vpack.c.bf16 %v339_v13, %v338_v12  ;;  %v407_v20 = vld [vmem:[#allocation3 + $0x13] sm:$0xff] }
  0xfe   :  { %1072 = vmatmul.mubr.msk.bf16.vlgmr.msra.gmra.mrb[4].mxu1 %vm172_vm1, %v217_v63  ;;  %v409_v18 = vpack.c.bf16 %v406_v15, %v405_v14  ;;  %v474_v22 = vld [vmem:[#allocation3 + $0x4] sm:$0xff]  ;;  %v475_v23 = vld [vmem:[#allocation3 + $0xc] sm:$0xff]  ;;  %v410_v24 = vpack.c.bf16 %v408_v21, %v407_v20  ;;  %v476_v27 = vld [vmem:[#allocation3 + $0x14] sm:$0xff] }
  0xff   :  { %1076 = vmatpush3.bf16.msra.mxu1 %v285_v0  ;;  %1077 = vmatprep.mubr.msk.bf16.mxu1 %vm172_vm1, %v209_v1  ;;  %v478_v26 = vpack.c.bf16 %v475_v23, %v474_v22  ;;  %v477_v28 = vld [vmem:[#allocation3 + $0x1c] sm:$0xff]  ;;  %v679_v59 = vld [vmem:[%s1420_s1 + $0x2c] sm:$0xf]  ;;  %v733_v1 = vld [vmem:[%s1420_s1 + $0x30] sm:$0xf] }
 0x100   :  { %1185 = vmatprep.subr.msk.bf16.mxu1 %vm225_vm2, %v342_v2  ;;  %v479_v29 = vpack.c.bf16 %v477_v28, %v476_v27  ;;  %v685_v61 = vsel %vm225_vm2, %v679_v59, 0  ;;  %v739_v3 = vsel %vm225_vm2, %v733_v1, 0  ;;  %v841_v14 = vld [vmem:[%s1420_s1 + $0x38] sm:$0xf]  ;;  %v1197_v21 = vld [vmem:[%s1420_s1 + $0x3c] sm:$0xff]   ;;  %v1198_v22 = vld [vmem:[%s1420_s1 + $0x44] sm:$0xff]  }
 0x101   :  { %v1015_v23 = vld [vmem:[%s1421_s2 + $0x4] ss:$0 sm:$0xff] }
 0x10a   :  { %1078 = vmatmul.mubr.msk.bf16.vlgmr.msra.gmra.mrb[4].mxu1 %vm172_vm1, %v210_v8  ;;  %v787_v8 = vld [vmem:[%s1420_s1 + $0x34] sm:$0xf] }
 0x10b   :  { %1082 = vmatpush3.bf16.msra.mxu1 %v350_v9  ;;  %1083 = vmatprep.mubr.msk.bf16.mxu1 %vm172_vm1, %v340_v10  ;;  %v793_v10 = vsel %vm225_vm2, %v787_v8, 0 }
 0x10c   :  { %1186 = vmatprep.subr.msk.bf16.mxu1 %vm225_vm2, %v411_v11 }
 0x116   :  { %1084 = vmatmul.mubr.msk.bf16.vlgmr.msra.gmra.mrb[4].mxu1 %vm172_vm1, %v341_v16  ;;  %v847_v16 = vsel %vm225_vm2, %v841_v14, 0 }
 0x117   :  { %1088 = vmatpush3.bf16.msra.mxu1 %v419_v17  ;;  %1089 = vmatprep.mubr.msk.bf16.mxu1 %vm172_vm1, %v409_v18 }
 0x118   :  { %1187 = vmatprep.subr.msk.bf16.mxu1 %vm225_vm2, %v480_v19 }
 0x122   :  { %1090 = vmatmul.mubr.msk.bf16.vlgmr.msra.gmra.mrb[4].mxu1 %vm172_vm1, %v410_v24 }
 0x123   :  { %1094 = vmatpush3.bf16.msra.mxu1 %v488_v25  ;;  %1095 = vmatprep.mubr.msk.bf16.mxu1 %vm172_vm1, %v478_v26  ;;  %v1016_v25 = vld [vmem:[%s1421_s2 + $0x5] ss:$0 sm:$0xff] }
 0x124   :  { %1135 = vmatprep.subr.bf16.mxu1 %v1225_v6 }
 0x12e   :  { %1096 = vmatmul.mubr.msk.bf16.vlgmr.msra.gmra.mrb[4].mxu1 %vm172_vm1, %v479_v29 }
 0x12f   :  { %1139 = vmatprep.mubr.msk.bf16.mxu1 %vm1226_vm3, %v1225_v6  ;;  %1136 = vmatpush3.bf16.msra.mxu1 %v1197_v21 }
 0x130   :  { %1137 = vmatprep.subr.bf16.mxu1 %v1225_v6 }
 0x133   :  { %1138 = vmatpush3.bf16.msra.mxu1 %v1198_v22 }
 0x201   :  { %v1097_v33 = vpop.f32.mrb[4].mxu1 }
 0x202   :  { %v550_v35 = vmul.f32 %v1097_v33, %v1007_v32  ;;  %v524_v36 = vpop.f32.mrb[5].mxu1 }
 0x203   :  { %v548_v37 = vmul.f32 %v1007_v32, %v524_v36  ;;  %v1098_v38 = vpop.f32.mrb[6].mxu1 }
 0x204   :  { %v559_v39 = vadd.f32 %v1008_v34, %v550_v35  ;;  %v551_v40 = vmul.f32 %v1098_v38, %v1007_v32  ;;  %v527_v41 = vpop.f32.mrb[7].mxu1 }
 0x205   :  { %v557_v42 = vadd.f32 %v1008_v34, %v548_v37  ;;  %v549_v43 = vmul.f32 %v1007_v32, %v527_v41 }
 0x206   :  { %v563_v44 = vmax.f32 %v559_v39, 0.0  ;;  %v560_v45 = vadd.f32 %v1008_v34, %v551_v40 }
 0x207   :  { %v561_v46 = vmax.f32 %v557_v42, 0.0  ;;  %v558_v47 = vadd.f32 %v1008_v34, %v549_v43 }
 0x208   :  { %567 = vst.msk [vmem:[#allocation4 + $0x10] sm:$0xff] %vm172_vm1, %v563_v44  ;;  %v564_v48 = vmax.f32 %v560_v45, 0.0 }
 0x209   :  { %565 = vst.msk [vmem:[#allocation4] sm:$0xff] %vm172_vm1, %v561_v46  ;;  %v562_v49 = vmax.f32 %v558_v47, 0.0 }
 0x20a   :  { %568 = vst.msk [vmem:[#allocation4 + $0x18] sm:$0xff] %vm172_vm1, %v564_v48 }
 0x20b   :  { %566 = vst.msk [vmem:[#allocation4 + $0x8] sm:$0xff] %vm172_vm1, %v562_v49 }
 0x210   :  { %v576_v51 = vld [vmem:[#allocation4 + $0x2] ss:$16 sm:$0x3]  ;;  %v578_v52 = vld [vmem:[#allocation4 + $0x3] ss:$16 sm:$0x3] }
 0x211   :  { %v579_v53 = vmax.f32 %v576_v51, %v578_v52  ;;  %v569_v56 = vld [vmem:[#allocation4] ss:$16 sm:$0x3]  ;;  %v571_v57 = vld [vmem:[#allocation4 + $0x1] ss:$16 sm:$0x3] }
 0x212   :  { %v572_v58 = vmax.f32 %v569_v56, %v571_v57  ;;  %v675_v62 = vld [vmem:[#allocation4 + $0x4] ss:$16 sm:$0x3]  ;;  %v677_v63 = vld [vmem:[#allocation4 + $0x5] ss:$16 sm:$0x3] }
 0x213   :  { %v581_v54 = vpack.c.bf16 %v579_v53, %v579_v53  ;;  %v678_v0 = vmax.f32 %v675_v62, %v677_v63  ;;  %v729_v4 = vld [vmem:[#allocation4 + $0x6] ss:$16 sm:$0x3]  ;;  %v731_v5 = vld [vmem:[#allocation4 + $0x7] ss:$16 sm:$0x3] }
 0x214   :  { %v574_v60 = vpack.c.bf16 %v572_v58, %v572_v58  ;;  %v732_v7 = vmax.f32 %v729_v4, %v731_v5  ;;  %v783_v11 = vld [vmem:[#allocation4 + $0x8] ss:$16 sm:$0x3]  ;;  %v785_v12 = vld [vmem:[#allocation4 + $0x9] ss:$16 sm:$0x3] }
 0x215   :  { %1102 = vmatmul.mubr.msk.bf16.vlgmr.msra.gmra.mrb[4].mxu0 %vm172_vm1, %v581_v54  ;;  %v680_v2 = vpack.c.bf16 %v678_v0, %v678_v0  ;;  %v786_v13 = vmax.f32 %v783_v11, %v785_v12  ;;  %v837_v17 = vld [vmem:[#allocation4 + $0xa] ss:$16 sm:$0x3]  ;;  %v839_v18 = vld [vmem:[#allocation4 + $0xb] ss:$16 sm:$0x3] }
 0x216   :  { %1106 = vmatpush3.bf16.msra.mxu0 %v632_v55  ;;  %1107 = vmatprep.mubr.msk.bf16.mxu0 %vm1226_vm3, %v1225_v6  ;;  %v734_v9 = vpack.c.bf16 %v732_v7, %v732_v7  ;;  %v840_v19 = vmax.f32 %v837_v17, %v839_v18 }
 0x217   :  { %1111 = vmatprep.subr.bf16.mxu0 %v1225_v6  ;;  %v788_v15 = vpack.c.bf16 %v786_v13, %v786_v13 }
 0x218   :  { %v842_v20 = vpack.c.bf16 %v840_v19, %v840_v19 }
 0x221   :  { %1108 = vmatmul.mubr.msk.bf16.vlgmr.msra.gmra.mrb[4].mxu0 %vm172_vm1, %v574_v60 }
 0x222   :  { %1112 = vmatpush3.bf16.msra.mxu0 %v685_v61  ;;  %1113 = vmatprep.mubr.msk.bf16.mxu0 %vm1226_vm3, %v1225_v6 }
 0x223   :  { %1117 = vmatprep.subr.bf16.mxu0 %v1225_v6 }
 0x22d   :  { %1114 = vmatmul.mubr.msk.bf16.vlgmr.msra.gmra.mrb[4].mxu0 %vm172_vm1, %v680_v2 }
 0x22e   :  { %1118 = vmatpush3.bf16.msra.mxu0 %v739_v3  ;;  %1119 = vmatprep.mubr.msk.bf16.mxu0 %vm1226_vm3, %v1225_v6 }
 0x22f   :  { %1123 = vmatprep.subr.bf16.mxu0 %v1225_v6 }
 0x239   :  { %1120 = vmatmul.mubr.msk.bf16.vlgmr.msra.gmra.mrb[4].mxu0 %vm172_vm1, %v734_v9 }
 0x23a   :  { %1124 = vmatpush3.bf16.msra.mxu0 %v793_v10  ;;  %1125 = vmatprep.mubr.msk.bf16.mxu0 %vm1226_vm3, %v1225_v6 }
 0x23b   :  { %1129 = vmatprep.subr.bf16.mxu0 %v1225_v6 }
 0x245   :  { %1126 = vmatmul.mubr.msk.bf16.vlgmr.msra.gmra.mrb[4].mxu0 %vm172_vm1, %v788_v15 }
 0x246   :  { %1130 = vmatpush3.bf16.msra.mxu0 %v847_v16  ;;  %1131 = vmatprep.mubr.msk.bf16.mxu0 %vm1226_vm3, %v1225_v6  ;;  %v1017_v6 = vld [vmem:[%s1421_s2 + $0x6] ss:$0 sm:$0xff] }
 0x251   :  { %1132 = vmatmul.mubr.msk.bf16.vlgmr.msra.gmra.mrb[4].mxu0 %vm172_vm1, %v842_v20 }
 0x324   :  { %v883_v24 = vpop.f32.mrb[4].mxu0 }
 0x325   :  { %v895_v26 = vmul.f32 %v1015_v23, %v883_v24  ;;  %v1133_v27 = vpop.f32.mrb[5].mxu0 }
 0x326   :  { %v886_v28 = vpop.f32.mrb[6].mxu0 }
 0x327   :  { %v901_v29 = vadd.f32 %v1016_v25, %v895_v26  ;;  %v1134_v30 = vpop.f32.mrb[7].mxu0 }
 0x329   :  { %v902_v31 = vmax.f32 %v901_v29, 0.0 }
 0x32b   :  { %v903_v32 = vpack.c.bf16 %v902_v31, %v902_v31 }
 0x32d   :  { %1140 = vmatmul.mubr.msk.bf16.vlgmr.msra.gmra.mrb[8].mxu1 %vm60_vm0, %v903_v32 }
 0x400   :  { %v962_v33 = vpop.f32.mrb[8].mxu1 }
 0x401   :  { %v963_v34 = vadd.f32 %v1017_v6, %v962_v33  ;;  %v1141_v35 = vpop.f32.mrb[9].mxu1 }
 0x402   :  { %v965_v36 = vpop.f32.mrb[10].mxu1 }
 0x403   :  { %1199 = vtanh.f32 %v963_v34  ;;  %v1142_v37 = vpop.f32.mrb[11].mxu1 }
 0x40d   :  { %v1200_v38 = vpop.eup %1199 }
 0x40e   :  { %970 = vst.msk [vmem:[#allocation5] sm:$0x3] %vm969_vm4, %v1200_v38 }
 0x40f   :  { %1212 = shalt.err (!%p1209_p4)
}
 0x410   :  { %s1213_s11 = scalar_lea.hbm %s1422_s3, 32 }
 0x411   :  { %p1214_p5 = scmp.ne.s32.totalorder %s1422_s3, %s1213_s11  ;;  %p1217_p6 = scmp.lt.u32.totalorder %s1213_s11, %s1422_s3 }
 0x413   :  { %p1219_p7 = pnand %p1217_p6, %p1214_p5 }
 0x415   :  { %1222 = shalt.err (!%p1219_p7)
}
 0x416   :  { %980 = dma.vmem_to_hbm [thread:$0]  %s978_s8, 32, %s1422_s3, [#allocation6]  }
 0x417   :  { %1223 = dma.done.wait [#allocation6], 32  }
 0x418   :  { %1224 = vsyncadd [#allocation6], 4294967264 }
 0x419   :  { %984 = vsyncpa [#allocation6], 1 }

</bundles_post_ra>
